<compile_context>
chip_gen: v7x
topology: tpu7x:2x2x1
jax: 0.10.0
libtpu: 0.0.40
codegen_flags: <defaults>
</compile_context>

<pallas_src>
import functools
import math

import jax
import jax.numpy as jnp
from jax import lax
from jax.experimental import pallas as pl
from jax.experimental.pallas import tpu as pltpu

LOG_2PI = math.log(2.0 * math.pi)


def _round_up(n, m):
    return ((n + m - 1) // m) * m


# ----------------------------------------------------------------------------
# Prologue kernel: run the decoder MLP over the Nz distinct z rows ONCE and
# pack a lane-aligned gather matrix  G = [mu | pad | log_var | pad | z | pad].
# ----------------------------------------------------------------------------
def decode_z_kernel(z_ref, w0_ref, b0_ref, w1_ref, b1_ref, w2_ref, b2_ref,
                    wh_ref, bh_ref, g_ref):
    # TODO(synk): fc_block's BatchNorm1d (training-mode batch statistics) omitted;
    # identity at init / eval with default running stats.
    z = z_ref[...]                                                     # (Nzp, L) f32
    h = jnp.maximum(jnp.dot(z.astype(jnp.bfloat16), w0_ref[...],
                            preferred_element_type=jnp.float32) + b0_ref[...], 0.0)
    h = jnp.maximum(jnp.dot(h.astype(jnp.bfloat16), w1_ref[...],
                            preferred_element_type=jnp.float32) + b1_ref[...], 0.0)
    h = jnp.maximum(jnp.dot(h.astype(jnp.bfloat16), w2_ref[...],
                            preferred_element_type=jnp.float32) + b2_ref[...], 0.0)
    # fused, lane-aligned mu/log_var head: (Nzp, 2*cpad)
    head = jnp.dot(h.astype(jnp.bfloat16), wh_ref[...],
                   preferred_element_type=jnp.float32) + bh_ref[...]
    hw = head.shape[-1]
    g_ref[...] = jnp.zeros_like(g_ref)         # keep pad lanes defined
    g_ref[:, :hw] = head                       # lanes [0, 2*cpad)
    g_ref[:, hw:hw + z.shape[-1]] = z          # z copied at a 128-lane boundary


# ----------------------------------------------------------------------------
# Main batch-tiled kernel: dual-OT logits -> Gumbel-max sample -> one-hot ->
# exact MXU gather of [mu | log_var | z] -> Gaussian NLL -> packed output slab.
# ----------------------------------------------------------------------------
def sample_nll_kernel(u_ref, v_ref, c_ref, x_ref, gumb_ref, g_ref, out_ref,
                      *, reg, in_channels, cpad, latent_dim):
    # semi-dual entropic-OT coupling logits (log of unnormalized W_xz)
    logits = (u_ref[...] + v_ref[...] - c_ref[...]) * (1.0 / reg)       # (TB, Nzp)

    # Categorical(W_xz) sample via Gumbel-max (noise precomputed in the wrapper)
    scores = logits + gumb_ref[...]
    nzp = scores.shape[-1]
    col = lax.broadcasted_iota(jnp.int32, scores.shape, 1)
    m = jnp.max(scores, axis=-1, keepdims=True)
    sidx = jnp.min(jnp.where(scores >= m, col, nzp), axis=-1, keepdims=True)
    onehot = (col == sidx).astype(jnp.float32)                          # (TB, Nzp)

    # ONE exact gather on the MXU: rows of [mu | pad | log_var | pad | z | pad]
    sel = jnp.dot(onehot, g_ref[...],
                  preferred_element_type=jnp.float32,
                  precision=lax.Precision.HIGHEST)                      # (TB, 2*cpad+128k)
    mu = sel[:, :in_channels]
    log_var = sel[:, cpad:cpad + in_channels]
    z_s = sel[:, 2 * cpad:2 * cpad + latent_dim]

    # Gaussian NLL (Independent Normal over channels), all f32 on VPU/EUP
    diff = x_ref[...] - mu
    nll = 0.5 * jnp.sum(LOG_2PI + log_var + diff * diff * jnp.exp(-log_var),
                        axis=-1, keepdims=True)                         # (TB, 1)

    # lane-dense packed output slab: z_sample in lanes [0, L), nll in lane L
    out_ref[:, :latent_dim] = z_s
    out_ref[:, latent_dim:latent_dim + 1] = nll


# ----------------------------------------------------------------------------
# Wrapper: padding, batch tiling, XLA glue (u[idx] gather, v(z), Gumbel noise)
# ----------------------------------------------------------------------------
def coopcomm_forward(params, x, idx, z, C, key, reg, tile_b=None):
    B, cin = x.shape
    nz, L = z.shape

    cpad = _round_up(cin, 128)          # lane-aligned mu / log_var blocks
    nzp = _round_up(nz, 8)              # sublane-aligned gather-matrix rows
    gw = 2 * cpad + _round_up(L, 128)   # gather-matrix width (multiple of 128)
    ow = _round_up(L + 1, 128)          # packed output slab width

    if tile_b is None:
        # fill the MXU M dim (up to 512) but keep >=2 grid steps when possible
        # so both v7x TensorCores are used via the "parallel" grid axis
        tile_b = min(512, _round_up(max((B + 1) // 2, 8), 8))
    bp = _round_up(B, tile_b)
    grid = (bp // tile_b,)

    # --- tiny XLA glue: dual potentials and tiling-invariant Gumbel noise
    # TODO(synk): LargeScaleOT.DualOT source not provided; modeled as the standard
    # semi-dual entropic-OT coupling with per-datum dual u and v = Linear(L, 1).
    u_g = params["u"][idx][:, None].astype(jnp.float32)                 # (B, 1)
    v = (jnp.dot(z, params["wv"]) + params["bv"]).reshape(1, nz)        # (1, nz)
    gumbel = jax.random.gumbel(key, (bp, nzp), jnp.float32)             # (bp, Nzp)

    zp = jnp.pad(z, ((0, nzp - nz), (0, 0)))
    vp = jnp.pad(v, ((0, 0), (0, nzp - nz)))
    Cp = jnp.pad(C, ((0, bp - B), (0, nzp - nz)))
    if nzp != nz:                       # padded z columns must never be sampled
        Cp = Cp.at[:, nz:].set(1e30)
    u_p = jnp.pad(u_g, ((0, bp - B), (0, 0)))
    xp = jnp.pad(x, ((0, bp - B), (0, 0)))

    # --- prologue: decode all Nz rows once (whole arrays in VMEM, no grid)
    G = pl.pallas_call(
        decode_z_kernel,
        out_shape=jax.ShapeDtypeStruct((nzp, gw), jnp.float32),
    )(zp, params["w0"], params["b0"], params["w1"], params["b1"],
      params["w2"], params["b2"], params["wh"], params["bh"])

    # --- main batch-tiled kernel
    out = pl.pallas_call(
        functools.partial(sample_nll_kernel, reg=float(reg), in_channels=cin,
                          cpad=cpad, latent_dim=L),
        grid=grid,
        in_specs=[
            pl.BlockSpec((tile_b, 1), lambda i: (i, 0)),      # u[idx]
            pl.BlockSpec((1, nzp), lambda i: (0, 0)),         # v(z)   (resident)
            pl.BlockSpec((tile_b, nzp), lambda i: (i, 0)),    # C
            pl.BlockSpec((tile_b, cin), lambda i: (i, 0)),    # x
            pl.BlockSpec((tile_b, nzp), lambda i: (i, 0)),    # Gumbel noise
            pl.BlockSpec((nzp, gw), lambda i: (0, 0)),        # G      (resident)
        ],
        out_specs=pl.BlockSpec((tile_b, ow), lambda i: (i, 0)),
        out_shape=jax.ShapeDtypeStruct((bp, ow), jnp.float32),
        compiler_params=pltpu.CompilerParams(
            dimension_semantics=("parallel",)),
    )(u_p, vp, Cp, xp, gumbel, G)

    z_sample = out[:B, :L]
    C_ = out[:B, L]
    return C_, z_sample


def dec_loss(C_):
    return jnp.mean(C_)


# ----------------------------------------------------------------------------
# Parameter init (PyTorch nn.Linear-style uniform(+-1/sqrt(fan_in)))
# ----------------------------------------------------------------------------
def init_params(key, in_channels, latent_dim, n_channels, num_data):
    def linear(k, fan_in, fan_out):
        k1, k2 = jax.random.split(k)
        bound = 1.0 / math.sqrt(fan_in)
        w = jax.random.uniform(k1, (fan_in, fan_out), jnp.float32, -bound, bound)
        b = jax.random.uniform(k2, (1, fan_out), jnp.float32, -bound, bound)
        return w, b

    keys = jax.random.split(key, 8)
    w0, b0 = linear(keys[0], latent_dim, n_channels[0])       # decoder_input (BN=False)
    w1, b1 = linear(keys[1], n_channels[0], n_channels[1])    # decoder[0]
    w2, b2 = linear(keys[2], n_channels[1], n_channels[2])    # decoder[1]
    wmu, bmu = linear(keys[3], n_channels[2], in_channels)    # fc_mu
    wlv, blv = linear(keys[4], n_channels[2], in_channels)    # fc_var
    u = 0.01 * jax.random.normal(keys[5], (num_data,), jnp.float32)
    wv, bv = linear(keys[6], latent_dim, 1)                   # v(z) potential

    # lane-aligned fused head: mu weights in lanes [0, cpad), log_var in [cpad, 2*cpad)
    cpad = _round_up(in_channels, 128)
    wh = jnp.zeros((n_channels[2], 2 * cpad), jnp.float32)
    wh = wh.at[:, :in_channels].set(wmu).at[:, cpad:cpad + in_channels].set(wlv)
    bh = jnp.zeros((1, 2 * cpad), jnp.float32)
    bh = bh.at[:, :in_channels].set(bmu).at[:, cpad:cpad + in_channels].set(blv)

    bf = jnp.bfloat16
    return {
        "w0": w0.astype(bf), "b0": b0,
        "w1": w1.astype(bf), "b1": b1,
        "w2": w2.astype(bf), "b2": b2,
        "wh": wh.astype(bf), "bh": bh,
        "u": u, "wv": wv, "bv": bv,
    }


if __name__ == "__main__":
    key = jax.random.PRNGKey(0)
    kp, kx, kz, kC, ki, ks = jax.random.split(key, 6)

    # small, module-consistent shapes
    B = 8              # batch of data points x
    in_channels = 16   # data dimensionality
    latent_dim = 8
    Nz = 8             # number of latent samples z
    num_data = 32
    reg = 0.1
    n_channels = [128, 256, 512]   # Decoder defaults

    params = init_params(kp, in_channels, latent_dim, n_channels, num_data)

    x = jax.random.normal(kx, (B, in_channels), jnp.float32)
    z = jax.random.normal(kz, (Nz, latent_dim), jnp.float32)
    idx = jax.random.randint(ki, (B,), 0, num_data)
    # cost matrix C (as produced by make_cost); synthetic positive values
    C = jax.random.uniform(kC, (B, Nz), jnp.float32, 0.0, 10.0)

    fwd = jax.jit(coopcomm_forward, static_argnames=("reg", "tile_b"))
    C_, z_sample = fwd(params, x, idx, z, C, ks, reg=reg)
    loss = dec_loss(C_)
    jax.block_until_ready((C_, z_sample, loss))

    assert C_.shape == (B,) and z_sample.shape == (B, latent_dim)
    assert bool(jnp.all(jnp.isfinite(C_)))
    # each sampled latent must (numerically) equal one of the rows of z
    match = jnp.any(jnp.all(jnp.abs(z_sample[:, None, :] - z[None, :, :]) < 1e-5,
                            axis=-1), axis=-1)
    assert bool(jnp.all(match))
    print("KERNEL_OK")
</pallas_src>

<mosaic_0001>
module attributes {stable_mosaic.version = 11 : i64} {
  func.func @sample_nll_kernel(%arg0: i32, %arg1: memref<8x1xf32, #tpu.memory_space<vmem>>, %arg2: memref<1x8xf32, #tpu.memory_space<vmem>>, %arg3: memref<8x8xf32, #tpu.memory_space<vmem>>, %arg4: memref<8x16xf32, #tpu.memory_space<vmem>>, %arg5: memref<8x8xf32, #tpu.memory_space<vmem>>, %arg6: memref<8x384xf32, #tpu.memory_space<vmem>>, %arg7: memref<8x128xf32, #tpu.memory_space<vmem>>) attributes {dimension_semantics = [#tpu.dimension_semantics<parallel>], iteration_bounds = array<i64: 1>, scalar_prefetch = 0 : i64, scratch_operands = 0 : i64, tpu.core_type = #tpu.core_type<tc>, window_params = [{transform_indices = @transform_0, window_bounds = array<i64: 8, 1>}, {pipeline_mode = #tpu.pipeline_mode<synchronous>, transform_indices = @transform_1, window_bounds = array<i64: 1, 8>}, {transform_indices = @transform_2, window_bounds = array<i64: 8, 8>}, {transform_indices = @transform_3, window_bounds = array<i64: 8, 16>}, {transform_indices = @transform_4, window_bounds = array<i64: 8, 8>}, {pipeline_mode = #tpu.pipeline_mode<synchronous>, transform_indices = @transform_5, window_bounds = array<i64: 8, 384>}, {transform_indices = @transform_6, window_bounds = array<i64: 8, 128>}]} {
    %c0 = arith.constant 0 : index
    %c0_0 = arith.constant 0 : index
    %0 = vector.load %arg1[%c0, %c0_0] : memref<8x1xf32, #tpu.memory_space<vmem>>, vector<8x1xf32>
    %c0_1 = arith.constant 0 : index
    %c0_2 = arith.constant 0 : index
    %1 = vector.load %arg2[%c0_1, %c0_2] : memref<1x8xf32, #tpu.memory_space<vmem>>, vector<1x8xf32>
    %2 = vector.broadcast %0 : vector<8x1xf32> to vector<8x8xf32>
    %3 = vector.broadcast %1 : vector<1x8xf32> to vector<8x8xf32>
    %4 = arith.addf %2, %3 : vector<8x8xf32>
    %c0_3 = arith.constant 0 : index
    %c0_4 = arith.constant 0 : index
    %5 = vector.load %arg3[%c0_3, %c0_4] : memref<8x8xf32, #tpu.memory_space<vmem>>, vector<8x8xf32>
    %6 = arith.subf %4, %5 : vector<8x8xf32>
    %cst = arith.constant 1.000000e+01 : f32
    %7 = vector.broadcast %cst : f32 to vector<8x8xf32>
    %8 = arith.mulf %6, %7 : vector<8x8xf32>
    %c0_5 = arith.constant 0 : index
    %c0_6 = arith.constant 0 : index
    %9 = vector.load %arg5[%c0_5, %c0_6] : memref<8x8xf32, #tpu.memory_space<vmem>>, vector<8x8xf32>
    %10 = arith.addf %8, %9 : vector<8x8xf32>
    %11 = tpu.iota {dimensions = array<i32: 1>} : vector<8x8xi32>
    %cst_7 = arith.constant dense<0xFF800000> : vector<8xf32>
    %12 = vector.multi_reduction <maximumf>, %10, %cst_7 [1] : vector<8x8xf32> to vector<8xf32>
    %13 = vector.shape_cast %12 : vector<8xf32> to vector<8x1xf32>
    %14 = vector.broadcast %13 : vector<8x1xf32> to vector<8x8xf32>
    %15 = arith.cmpf oge, %10, %14 : vector<8x8xf32>
    %c8_i32 = arith.constant 8 : i32
    %16 = vector.broadcast %c8_i32 : i32 to vector<8x8xi32>
    %17 = arith.select %15, %11, %16 : vector<8x8xi1>, vector<8x8xi32>
    %cst_8 = arith.constant dense<2147483647> : vector<8xi32>
    %18 = vector.multi_reduction <minsi>, %17, %cst_8 [1] : vector<8x8xi32> to vector<8xi32>
    %19 = vector.shape_cast %18 : vector<8xi32> to vector<8x1xi32>
    %20 = vector.broadcast %19 : vector<8x1xi32> to vector<8x8xi32>
    %21 = arith.cmpi eq, %11, %20 : vector<8x8xi32>
    %22 = arith.extui %21 : vector<8x8xi1> to vector<8x8xi32>
    %23 = arith.sitofp %22 : vector<8x8xi32> to vector<8x8xf32>
    %c0_9 = arith.constant 0 : index
    %c0_10 = arith.constant 0 : index
    %24 = vector.load %arg6[%c0_9, %c0_10] : memref<8x384xf32, #tpu.memory_space<vmem>>, vector<8x384xf32>
    %cst_11 = arith.constant dense<0.000000e+00> : vector<8x384xf32>
    %25 = tpu.matmul %23, %24, %cst_11 {dimension_numbers = #tpu.dot_dimension_numbers<[1], [0], [0], [1], [0, 0, 1, 1], [], []>, precision = #tpu.contract_precision<fp32>} : vector<8x8xf32>, vector<8x384xf32>, vector<8x384xf32> -> vector<8x384xf32>
    %26 = vector.extract_strided_slice %25 {offsets = [0, 0], sizes = [8, 16], strides = [1, 1]} : vector<8x384xf32> to vector<8x16xf32>
    %27 = vector.extract_strided_slice %25 {offsets = [0, 128], sizes = [8, 16], strides = [1, 1]} : vector<8x384xf32> to vector<8x16xf32>
    %28 = vector.extract_strided_slice %25 {offsets = [0, 256], sizes = [8, 8], strides = [1, 1]} : vector<8x384xf32> to vector<8x8xf32>
    %c0_12 = arith.constant 0 : index
    %c0_13 = arith.constant 0 : index
    %29 = vector.load %arg4[%c0_12, %c0_13] : memref<8x16xf32, #tpu.memory_space<vmem>>, vector<8x16xf32>
    %30 = arith.subf %29, %26 : vector<8x16xf32>
    %cst_14 = arith.constant 1.83787704 : f32
    %31 = vector.broadcast %cst_14 : f32 to vector<8x16xf32>
    %32 = arith.addf %31, %27 : vector<8x16xf32>
    %33 = arith.mulf %30, %30 : vector<8x16xf32>
    %cst_15 = arith.constant 0.000000e+00 : f32
    %34 = vector.broadcast %cst_15 : f32 to vector<8x16xf32>
    %35 = arith.subf %34, %27 : vector<8x16xf32>
    %36 = math.exp %35 : vector<8x16xf32>
    %37 = arith.mulf %33, %36 : vector<8x16xf32>
    %38 = arith.addf %32, %37 : vector<8x16xf32>
    %cst_16 = arith.constant dense<0.000000e+00> : vector<8xf32>
    %39 = vector.multi_reduction <add>, %38, %cst_16 [1] : vector<8x16xf32> to vector<8xf32>
    %40 = vector.shape_cast %39 : vector<8xf32> to vector<8x1xf32>
    %cst_17 = arith.constant 5.000000e-01 : f32
    %41 = vector.broadcast %cst_17 : f32 to vector<8x1xf32>
    %42 = arith.mulf %41, %40 : vector<8x1xf32>
    %c0_18 = arith.constant 0 : index
    %c0_19 = arith.constant 0 : index
    %43 = vector.load %arg7[%c0_18, %c0_19] : memref<8x128xf32, #tpu.memory_space<vmem>>, vector<8x8xf32>
    tpu.vector_store %arg7[%c0_18, %c0_19], %28 {strides = array<i32>} : memref<8x128xf32, #tpu.memory_space<vmem>>, vector<8x8xf32>,
    %c0_20 = arith.constant 0 : index
    %c8 = arith.constant 8 : index
    %44 = vector.load %arg7[%c0_20, %c8] : memref<8x128xf32, #tpu.memory_space<vmem>>, vector<8x1xf32>
    tpu.vector_store %arg7[%c0_20, %c8], %42 {strides = array<i32>} : memref<8x128xf32, #tpu.memory_space<vmem>>, vector<8x1xf32>,
    return
  }
  func.func @transform_0(%arg0: i32) -> (i32, i32) {
    %c0_i32 = arith.constant 0 : i32
    %c0_i32_0 = arith.constant 0 : i32
    return %arg0, %c0_i32 : i32, i32
  }
  func.func @transform_1(%arg0: i32) -> (i32, i32) {
    %c0_i32 = arith.constant 0 : i32
    %c0_i32_0 = arith.constant 0 : i32
    %c0_i32_1 = arith.constant 0 : i32
    return %c0_i32, %c0_i32_0 : i32, i32
  }
  func.func @transform_2(%arg0: i32) -> (i32, i32) {
    %c0_i32 = arith.constant 0 : i32
    %c0_i32_0 = arith.constant 0 : i32
    return %arg0, %c0_i32 : i32, i32
  }
  func.func @transform_3(%arg0: i32) -> (i32, i32) {
    %c0_i32 = arith.constant 0 : i32
    %c0_i32_0 = arith.constant 0 : i32
    return %arg0, %c0_i32 : i32, i32
  }
  func.func @transform_4(%arg0: i32) -> (i32, i32) {
    %c0_i32 = arith.constant 0 : i32
    %c0_i32_0 = arith.constant 0 : i32
    return %arg0, %c0_i32 : i32, i32
  }
  func.func @transform_5(%arg0: i32) -> (i32, i32) {
    %c0_i32 = arith.constant 0 : i32
    %c0_i32_0 = arith.constant 0 : i32
    %c0_i32_1 = arith.constant 0 : i32
    return %c0_i32, %c0_i32_0 : i32, i32
  }
  func.func @transform_6(%arg0: i32) -> (i32, i32) {
    %c0_i32 = arith.constant 0 : i32
    %c0_i32_0 = arith.constant 0 : i32
    return %arg0, %c0_i32 : i32, i32
  }
}

module attributes {stable_mosaic.version = 11 : i64} {
  func.func @decode_z_kernel(%arg0: memref<8x8xf32, #tpu.memory_space<vmem>>, %arg1: memref<8x128xbf16, #tpu.memory_space<vmem>>, %arg2: memref<1x128xf32, #tpu.memory_space<vmem>>, %arg3: memref<128x256xbf16, #tpu.memory_space<vmem>>, %arg4: memref<1x256xf32, #tpu.memory_space<vmem>>, %arg5: memref<256x512xbf16, #tpu.memory_space<vmem>>, %arg6: memref<1x512xf32, #tpu.memory_space<vmem>>, %arg7: memref<512x256xbf16, #tpu.memory_space<vmem>>, %arg8: memref<1x256xf32, #tpu.memory_space<vmem>>, %arg9: memref<8x384xf32, #tpu.memory_space<vmem>>) attributes {dimension_semantics = [], scalar_prefetch = 0 : i64, scratch_operands = 0 : i64, tpu.core_type = #tpu.core_type<tc>} {
    %c0 = arith.constant 0 : index
    %c0_0 = arith.constant 0 : index
    %0 = vector.load %arg0[%c0, %c0_0] : memref<8x8xf32, #tpu.memory_space<vmem>>, vector<8x8xf32>
    %1 = arith.truncf %0 : vector<8x8xf32> to vector<8x8xbf16>
    %c0_1 = arith.constant 0 : index
    %c0_2 = arith.constant 0 : index
    %2 = vector.load %arg1[%c0_1, %c0_2] : memref<8x128xbf16, #tpu.memory_space<vmem>>, vector<8x128xbf16>
    %cst = arith.constant dense<0.000000e+00> : vector<8x128xf32>
    %3 = tpu.matmul %1, %2, %cst {dimension_numbers = #tpu.dot_dimension_numbers<[1], [0], [0], [1], [0, 0, 1, 1], [], []>} : vector<8x8xbf16>, vector<8x128xbf16>, vector<8x128xf32> -> vector<8x128xf32>
    %c0_3 = arith.constant 0 : index
    %c0_4 = arith.constant 0 : index
    %4 = vector.load %arg2[%c0_3, %c0_4] : memref<1x128xf32, #tpu.memory_space<vmem>>, vector<1x128xf32>
    %5 = vector.broadcast %4 : vector<1x128xf32> to vector<8x128xf32>
    %6 = arith.addf %3, %5 : vector<8x128xf32>
    %cst_5 = arith.constant 0.000000e+00 : f32
    %7 = vector.broadcast %cst_5 : f32 to vector<8x128xf32>
    %8 = arith.maximumf %6, %7 : vector<8x128xf32>
    %9 = arith.truncf %8 : vector<8x128xf32> to vector<8x128xbf16>
    %c0_6 = arith.constant 0 : index
    %c0_7 = arith.constant 0 : index
    %10 = vector.load %arg3[%c0_6, %c0_7] : memref<128x256xbf16, #tpu.memory_space<vmem>>, vector<128x256xbf16>
    %cst_8 = arith.constant dense<0.000000e+00> : vector<8x256xf32>
    %11 = tpu.matmul %9, %10, %cst_8 {dimension_numbers = #tpu.dot_dimension_numbers<[1], [0], [0], [1], [0, 0, 1, 1], [], []>} : vector<8x128xbf16>, vector<128x256xbf16>, vector<8x256xf32> -> vector<8x256xf32>
    %c0_9 = arith.constant 0 : index
    %c0_10 = arith.constant 0 : index
    %12 = vector.load %arg4[%c0_9, %c0_10] : memref<1x256xf32, #tpu.memory_space<vmem>>, vector<1x256xf32>
    %13 = vector.broadcast %12 : vector<1x256xf32> to vector<8x256xf32>
    %14 = arith.addf %11, %13 : vector<8x256xf32>
    %cst_11 = arith.constant 0.000000e+00 : f32
    %15 = vector.broadcast %cst_11 : f32 to vector<8x256xf32>
    %16 = arith.maximumf %14, %15 : vector<8x256xf32>
    %17 = arith.truncf %16 : vector<8x256xf32> to vector<8x256xbf16>
    %c0_12 = arith.constant 0 : index
    %c0_13 = arith.constant 0 : index
    %18 = vector.load %arg5[%c0_12, %c0_13] : memref<256x512xbf16, #tpu.memory_space<vmem>>, vector<256x512xbf16>
    %cst_14 = arith.constant dense<0.000000e+00> : vector<8x512xf32>
    %19 = tpu.matmul %17, %18, %cst_14 {dimension_numbers = #tpu.dot_dimension_numbers<[1], [0], [0], [1], [0, 0, 1, 1], [], []>} : vector<8x256xbf16>, vector<256x512xbf16>, vector<8x512xf32> -> vector<8x512xf32>
    %c0_15 = arith.constant 0 : index
    %c0_16 = arith.constant 0 : index
    %20 = vector.load %arg6[%c0_15, %c0_16] : memref<1x512xf32, #tpu.memory_space<vmem>>, vector<1x512xf32>
    %21 = vector.broadcast %20 : vector<1x512xf32> to vector<8x512xf32>
    %22 = arith.addf %19, %21 : vector<8x512xf32>
    %cst_17 = arith.constant 0.000000e+00 : f32
    %23 = vector.broadcast %cst_17 : f32 to vector<8x512xf32>
    %24 = arith.maximumf %22, %23 : vector<8x512xf32>
    %25 = arith.truncf %24 : vector<8x512xf32> to vector<8x512xbf16>
    %c0_18 = arith.constant 0 : index
    %c0_19 = arith.constant 0 : index
    %26 = vector.load %arg7[%c0_18, %c0_19] : memref<512x256xbf16, #tpu.memory_space<vmem>>, vector<512x256xbf16>
    %cst_20 = arith.constant dense<0.000000e+00> : vector<8x256xf32>
    %27 = tpu.matmul %25, %26, %cst_20 {dimension_numbers = #tpu.dot_dimension_numbers<[1], [0], [0], [1], [0, 0, 1, 1], [], []>} : vector<8x512xbf16>, vector<512x256xbf16>, vector<8x256xf32> -> vector<8x256xf32>
    %c0_21 = arith.constant 0 : index
    %c0_22 = arith.constant 0 : index
    %28 = vector.load %arg8[%c0_21, %c0_22] : memref<1x256xf32, #tpu.memory_space<vmem>>, vector<1x256xf32>
    %29 = vector.broadcast %28 : vector<1x256xf32> to vector<8x256xf32>
    %30 = arith.addf %27, %29 : vector<8x256xf32>
    %cst_23 = arith.constant 0.000000e+00 : f32
    %31 = vector.broadcast %cst_23 : f32 to vector<8x384xf32>
    %c0_24 = arith.constant 0 : index
    %c0_25 = arith.constant 0 : index
    %32 = vector.load %arg9[%c0_24, %c0_25] : memref<8x384xf32, #tpu.memory_space<vmem>>, vector<8x384xf32>
    tpu.vector_store %arg9[%c0_24, %c0_25], %31 {strides = array<i32>} : memref<8x384xf32, #tpu.memory_space<vmem>>, vector<8x384xf32>,
    %c0_26 = arith.constant 0 : index
    %c0_27 = arith.constant 0 : index
    %33 = vector.load %arg9[%c0_26, %c0_27] : memref<8x384xf32, #tpu.memory_space<vmem>>, vector<8x256xf32>
    tpu.vector_store %arg9[%c0_26, %c0_27], %30 {strides = array<i32>} : memref<8x384xf32, #tpu.memory_space<vmem>>, vector<8x256xf32>,
    %c0_28 = arith.constant 0 : index
    %c256 = arith.constant 256 : index
    %34 = vector.load %arg9[%c0_28, %c256] : memref<8x384xf32, #tpu.memory_space<vmem>>, vector<8x8xf32>
    tpu.vector_store %arg9[%c0_28, %c256], %0 {strides = array<i32>} : memref<8x384xf32, #tpu.memory_space<vmem>>, vector<8x8xf32>,
    return
  }
}

</mosaic_0001>

<bundles_post_ra>
// kernel: coopcomm_forward.3
= control target key start
LH: loop header
LB: loop body
LE: loop exit
PB: predicated region body
PF: predicated region fallthrough
CT: control target
= control target key end

     0   :  { %v1082_v0 = vmov 0   ;;  %vm44_vm0 = vcmask 64512   ;;  %v42_v11 = vlaneseq  ;;  %v1083_v18 = vmov 0.0   ;;  %s1197_s0 = inlined_call_operand.vmem [shape: f32[8,1], index: 0, kind: input, shape index: {}]   ;;  %s1198_s1 = inlined_call_operand.vmem [shape: f32[1,8], index: 1, kind: input, shape index: {}]   ;;  %s1199_s2 = inlined_call_operand.vmem [shape: f32[8,8], index: 2, kind: input, shape index: {}]   ;;  %s1200_s4 = inlined_call_operand.vmem [shape: f32[8,8], index: 4, kind: input, shape index: {}]   ;;  %s1201_s5 = inlined_call_operand.vmem [shape: f32[8,384], index: 5, kind: input, shape index: {}]   ;;  %s1202_s6 = inlined_call_operand.vmem [shape: f32[8,128], index: 6, kind: output, shape index: {}]   ;;  %s1203_s3 = inlined_call_operand.vmem [shape: f32[8,16], index: 3, kind: input, shape index: {}]  }
   0x1   :  { %1079 = vset.pattern.permute.xlu0 %v1082_v0  ;;  %v23_v1 = vld [vmem:[%s1197_s0] sm:$0xff]  ;;  %1026 = vmatprep.subr.mxu1 %v1083_v18  ;;  %v69_v23 = vld [vmem:[%s1201_s5 + $0x8] sm:$0xff]  ;;  %v70_v25 = vld [vmem:[%s1201_s5 + $0x10] sm:$0xff]  ;;  %vm1084_vm3 = vmmov 0   ;;  %vm994_vm5 = vcmask 130048   ;;  %vm1000_vm6 = vcmask 72768  }
   0x2   :  { %27 = vperm.xlu0 %1079, %v23_v1   ;;  %v1006_v2 = vld [vmem:[%s1198_s1] ss:$0 sm:$0xff]  ;;  %v43_v12 = vand.u32 127, %v42_v11  ;;  %140 = vmatprep.mubr.f32.mxu0 %v1083_v18  ;;  %v74_v26 = vand.u32 4294901760, %v69_v23  ;;  %v1149_v28 = vand.u32 4294901760, %v70_v25 }
   0x3   :  { %v37_v3 = vld [vmem:[%s1199_s2] sm:$0xff]  ;;  %1028 = vmatprep.mubr.msk.f32.mxu1 %vm1084_vm3, %v1083_v18 }
   0x4   :  { %v40_v7 = vld [vmem:[%s1200_s4] sm:$0xff]  ;;  %75 = vmatprep.subr.mxu0 %v74_v26  ;;  %v153_v29 = vsub.f32 %v69_v23, %v74_v26  ;;  %1027 = vmatpush3.msra.mxu1 %v1149_v28  ;;  %v617_v38 = vsub.f32 %v70_v25, %v1149_v28 }
   0x5   :  { %v68_v24 = vld [vmem:[%s1201_s5] sm:$0xff]  ;;  %1031 = vmatprep.subr.mxu1 %v1083_v18 }
   0x6   :  { %v1147_v27 = vand.u32 4294901760, %v68_v24  ;;  %v154_v30 = vand.u32 4294901760, %v153_v29  ;;  %v618_v42 = vand.u32 4294901760, %v617_v38  ;;  %v985_v58 = vld [vmem:[%s1203_s3] sm:$0xff] }
   0x8   :  { %77 = vmatpush1.msra.mxu0 %v1147_v27  ;;  %v155_v31 = vsub.f32 %v153_v29, %v154_v30  ;;  %v159_v37 = vsub.f32 %v68_v24, %v1147_v27  ;;  %v619_v47 = vsub.f32 %v617_v38, %v618_v42 }
   0xa   :  { %v156_v32 = vand.u32 4294901760, %v155_v31  ;;  %v160_v40 = vand.u32 4294901760, %v159_v37  ;;  %v620_v51 = vand.u32 4294901760, %v619_v47 }
   0xc   :  { %157 = vmatprep.subr.mxu0 %v156_v32  ;;  %v161_v45 = vsub.f32 %v159_v37, %v160_v40 }
   0xe   :  { %v162_v49 = vand.u32 4294901760, %v161_v45 }
  0x81   :  { %v28_v4 = vpop.permute.xlu0 %27 }
  0x82   :  { %v36_v5 = vadd.f32 %v1006_v2, %v28_v4 }
  0x84   :  { %v38_v6 = vsub.f32 %v36_v5, %v37_v3 }
  0x86   :  { %v39_v8 = vmul.f32 10.0, %v38_v6 }
  0x88   :  { %v41_v9 = vadd.f32 %v40_v7, %v39_v8 }
  0x8a   :  { %v45_v10 = vsel %vm44_vm0, %v41_v9, -inf }
  0x8b   :  { %46 = vmax.xlane.f32.xlu0 %v45_v10 }
 0x118   :  { %v47_v13 = vpop.xlane.xlu0 %46 }
 0x119   :  { %vm48_vm1 = vcmp.ge.f32.partialorder %v41_v9, %v47_v13 }
 0x11a   :  { %v49_v14 = vsel %vm48_vm1, %v43_v12, 8 }
 0x11b   :  { %v50_v15 = vsel %vm44_vm0, %v49_v14, 2147483647 }
 0x11c   :  { %v52_v16 = vshra.s32 %v50_v15, 16  ;;  %v51_v19 = vand.u32 65535, %v50_v15 }
 0x11e   :  { %v54_v17 = vcvt.s32.f32 %v52_v16  ;;  %v53_v21 = vcvt.s32.f32 %v51_v19 }
 0x120   :  { %55 = vmin.xlane.f32.xlu1 %v54_v17 }
 0x1ad   :  { %v56_v20 = vpop.xlane.xlu1 %55 }
 0x1ae   :  { %vm57_vm2 = vcmp.eq.f32.partialorder %v54_v17, %v56_v20  ;;  %v62_v33 = vcvt.f32.s32 %v56_v20 }
 0x1af   :  { %v58_v22 = vsel %vm57_vm2, %v53_v21, inf }
 0x1b0   :  { %59 = vmin.xlane.f32.xlu1 %v58_v22  ;;  %v63_v35 = vshll.u32 %v62_v33, 16 }
 0x23d   :  { %v60_v34 = vpop.xlane.xlu1 %59 }
 0x23e   :  { %v61_v36 = vcvt.f32.s32 %v60_v34 }
 0x240   :  { %v64_v39 = vadd.s32 %v63_v35, %v61_v36 }
 0x242   :  { %vm65_vm4 = vcmp.eq.s32.totalorder %v43_v12, %v64_v39 }
 0x243   :  { %v1007_v41 = vsel %vm65_vm4, 1.0, %v1083_v18 }
 0x244   :  { %v72_v43 = vsel %vm44_vm0, %v1007_v41, 0 }
 0x245   :  { %v142_v44 = vsub.f32 %v72_v43, %v72_v43 }
 0x247   :  { %v143_v46 = vand.u32 4294901760, %v142_v44 }
 0x249   :  { %v144_v48 = vsub.f32 %v142_v44, %v143_v46 }
 0x24b   :  { %v145_v50 = vand.u32 4294901760, %v144_v48 }
 0x24d   :  { %146 = vmatmul.mubr.f32.vlgmr.msra.gmra.mrb[0].mxu0 %v145_v50  ;;  %1029 = vmatmul.mubr.f32.vlgmr.msra.gmra.mrb[0].mxu1 %v145_v50 }
 0x24e   :  { %163 = vmatpush1.msra.mxu0 %v162_v49  ;;  %226 = vmatprep.mubr.f32.mxu0 %v1083_v18 }
 0x24f   :  { %236 = vmatprep.subr.mxu0 %v153_v29  ;;  %1032 = vmatpush3.msra.mxu1 %v620_v51 }
 0x250   :  { %1033 = vmatprep.mubr.msk.f32.mxu1 %vm1084_vm3, %v1083_v18  ;;  %1036 = vmatprep.subr.mxu1 %v1083_v18 }
 0x255   :  { %1008 = vmatmul.mubr.msk.f32.vlgmr.msra.gmra.mrb[0].mxu0 %vm44_vm0, %v1007_v41  ;;  %1034 = vmatmul.mubr.msk.f32.vlgmr.msra.gmra.mrb[0].mxu1 %vm44_vm0, %v1007_v41 }
 0x256   :  { %239 = vmatpush1.msra.mxu0 %v159_v37  ;;  %302 = vmatprep.mubr.f32.mxu0 %v1083_v18 }
 0x257   :  { %312 = vmatprep.subr.mxu0 %v74_v26  ;;  %1037 = vmatpush3.msra.mxu1 %v617_v38 }
 0x258   :  { %1038 = vmatprep.mubr.msk.f32.mxu1 %vm1084_vm3, %v1083_v18  ;;  %1041 = vmatprep.subr.mxu1 %v1083_v18 }
 0x25d   :  { %305 = vmatmul.mubr.f32.vlgmr.msra.gmra.mrb[0].mxu0 %v142_v44  ;;  %1039 = vmatmul.mubr.f32.vlgmr.msra.gmra.mrb[0].mxu1 %v142_v44 }
 0x25e   :  { %314 = vmatpush1.msra.mxu0 %v1147_v27  ;;  %377 = vmatprep.mubr.f32.mxu0 %v1083_v18 }
 0x25f   :  { %390 = vmatprep.subr.mxu0 %v154_v30  ;;  %1042 = vmatpush3.msra.mxu1 %v1149_v28 }
 0x260   :  { %1043 = vmatprep.mubr.msk.f32.mxu1 %vm1084_vm3, %v1083_v18  ;;  %1046 = vmatprep.subr.mxu1 %v1083_v18 }
 0x265   :  { %381 = vmatmul.mubr.f32.vlgmr.msra.gmra.mrb[0].mxu0 %v143_v46  ;;  %1044 = vmatmul.mubr.f32.vlgmr.msra.gmra.mrb[0].mxu1 %v143_v46 }
 0x266   :  { %394 = vmatpush1.msra.mxu0 %v160_v40  ;;  %457 = vmatprep.mubr.f32.mxu0 %v1083_v18 }
 0x267   :  { %466 = vmatprep.subr.mxu0 %v74_v26  ;;  %1047 = vmatpush3.msra.mxu1 %v618_v42 }
 0x268   :  { %1048 = vmatprep.mubr.msk.f32.mxu1 %vm1084_vm3, %v1083_v18  ;;  %1051 = vmatprep.subr.mxu1 %v1083_v18 }
 0x26d   :  { %1009 = vmatmul.mubr.msk.f32.vlgmr.msra.gmra.mrb[0].mxu0 %vm44_vm0, %v1007_v41  ;;  %1049 = vmatmul.mubr.msk.f32.vlgmr.msra.gmra.mrb[0].mxu1 %vm44_vm0, %v1007_v41 }
 0x26e   :  { %468 = vmatpush1.msra.mxu0 %v1147_v27  ;;  %531 = vmatprep.mubr.f32.mxu0 %v1083_v18 }
 0x26f   :  { %1052 = vmatpush3.msra.mxu1 %v1149_v28  ;;  %1053 = vmatprep.mubr.msk.f32.mxu1 %vm1084_vm3, %v1083_v18 }
 0x275   :  { %1010 = vmatmul.mubr.msk.f32.vlgmr.msra.gmra.mrb[0].mxu0 %vm44_vm0, %v1007_v41  ;;  %1054 = vmatmul.mubr.msk.f32.vlgmr.msra.gmra.mrb[0].mxu1 %vm44_vm0, %v1007_v41 }
 0x348   :  { %v534_v52 = vpop.f32.mrb[0].mxu0  ;;  %v981_v53 = vpop.f32.mrb[0].mxu1 }
 0x349   :  { %999 = vst.msk [vmem:[%s1202_s6] sm:$0xff] %vm44_vm0, %v981_v53  ;;  %v536_v54 = vpop.f32.mrb[1].mxu0  ;;  %v1055_v55 = vpop.f32.mrb[1].mxu1  ;;  %v986_v59 = vsub.f32 %v985_v58, %v534_v52 }
 0x34a   :  { %v989_v56 = vsub.f32 0.0, %v536_v54  ;;  %v987_v62 = vadd.f32 1.837877, %v536_v54 }
 0x34b   :  { %v988_v60 = vmul.f32 %v986_v59, %v986_v59 }
 0x34c   :  { %v990_v57 = vmul.f32 1.442695, %v989_v56 }
 0x34e   :  { %1080 = vpow2.f32 %v990_v57 }
 0x358   :  { %v1081_v61 = vpop.eup %1080 }
 0x359   :  { %v992_v63 = vmul.f32 %v1081_v61, %v988_v60 }
 0x35b   :  { %v993_v0 = vadd.f32 %v992_v63, %v987_v62 }
 0x35d   :  { %v995_v1 = vsel %vm994_vm5, %v993_v0, 0.0 }
 0x35e   :  { %996 = vadd.xlane.f32.xlu1 %v995_v1 }
 0x3eb   :  { %v997_v2 = vpop.xlane.xlu1 %996 }
 0x3ec   :  { %v998_v3 = vmul.f32 0.5, %v997_v2 }
 0x3ee   :  { %1001 = vst.msk [vmem:[%s1202_s6] sm:$0xff] %vm1000_vm6, %v998_v3 }

// kernel: coopcomm_forward.2
= control target key start
LH: loop header
LB: loop body
LE: loop exit
PB: predicated region body
PF: predicated region fallthrough
CT: control target
= control target key end

     0   :  { %14 = vsyncpa [#allocation3], 0  ;;  %s1651_s30 = smov [#allocation2]   ;;  %s2159_s0 = inlined_call_operand.vmem [shape: f32[8,8], index: 0, kind: input, shape index: {}]   ;;  %s2160_s1 = inlined_call_operand.vmem [shape: bf16[8,128], index: 1, kind: input, shape index: {}]   ;;  %s2161_s2 = inlined_call_operand.vmem [shape: f32[1,128], index: 2, kind: input, shape index: {}]   ;;  %s2162_s3 = inlined_call_operand.hbm [shape: bf16[128,256], index: 3, kind: input, shape index: {}]   ;;  %s2163_s4 = inlined_call_operand.vmem [shape: f32[1,256], index: 4, kind: input, shape index: {}]   ;;  %s2164_s5 = inlined_call_operand.vmem [shape: bf16[256,512], index: 5, kind: input, shape index: {}]   ;;  %s2165_s6 = inlined_call_operand.vmem [shape: f32[1,512], index: 6, kind: input, shape index: {}]   ;;  %s2166_s7 = inlined_call_operand.vmem [shape: bf16[512,256], index: 7, kind: input, shape index: {}]   ;;  %s2167_s8 = inlined_call_operand.vmem [shape: f32[1,256], index: 8, kind: input, shape index: {}]   ;;  %s2168_s9 = inlined_call_operand.vmem [shape: f32[8,384], index: 9, kind: output, shape index: {}]  }
   0x1   :  { %s26_s10 = sshll.u32 %s1651_s30, 4  ;;  %s1627_s13 = scalar_lea.hbm %s2162_s3, 2048  ;;  %s27_s10 = int_to_ptr.vmem [resolvable:$true] %s26_s10 }
   0x2   :  { %p1628_p0 = scmp.ne.s32.totalorder %s2162_s3, %s1627_s13  ;;  %p1631_p1 = scmp.lt.u32.totalorder %s1627_s13, %s2162_s3 }
   0x4   :  { %p1633_p2 = pnand %p1631_p1, %p1628_p0 }
   0x6   :  { %1636 = shalt.err (!%p1633_p2)
}
   0x7   :  { %s1637_s18 = scalar_lea.vmem %s27_s10, 2048  ;;  %p1642_p4 = scmp.lt.s32.totalorder %s27_s10, %s27_s10 }
   0x8   :  { %p1638_p3 = scmp.ne.s32.totalorder %s27_s10, %s1637_s18  ;;  %p1643_p5 = scmp.lt.s32.totalorder %s1637_s18, %s1637_s18 }
   0xa   :  { %p1644_p6 = por %p1643_p5, %p1642_p4 }
   0xc   :  { %p1645_p7 = pnand %p1644_p6, %p1638_p3 }
   0xe   :  { %1648 = shalt.err (!%p1645_p7)
}
   0xf   :  { %s1652_s19 = smov 128   ;;  %s1653_s20 = smov 8  }
  0x10   :  { %32 = dma.hbm_to_vmem [thread:$0]  %s2162_s3, 2048, %s27_s10, [#allocation3], %s1652_s19, %s1652_s19, %s1653_s20  }
  0x11   :  { %1649 = dma.done.wait [#allocation3], 2048  }
  0x12   :  { %1650 = vsyncadd [#allocation3], 4294965248  ;;  %v1654_v0 = vmov 0.0   ;;  %vm1655_vm0 = vmmov 0   ;;  %vm61_vm1 = vcmask 1043456   ;;  %v47_v2 = vld [vmem:[%s2159_s0] sm:$0xff] }
  0x13   :  { %1393 = vmatprep.subr.bf16.mxu0 %v1654_v0  ;;  %1236 = vst [vmem:[%s2168_s9 + $0x10] sm:$0xff] %v1654_v0  ;;  %1395 = vmatprep.mubr.msk.bf16.mxu0 %vm1655_vm0, %v1654_v0  ;;  %v49_v1 = vld [vmem:[%s2160_s1] sm:$0xf]  ;;  %vm57_vm2 = vcmask 64512   ;;  %v48_v4 = vpack.c.bf16 %v47_v2, %v47_v2  ;;  %v1411_v5 = vld [vmem:[#allocation2 + $0x4] ss:$8 sps:$4 sm:$0xff]  }
  0x14   :  { %v63_v3 = vsel %vm61_vm1, %v49_v1, 0  ;;  %1239 = vst.msk [vmem:[%s2168_s9 + $0x10] sm:$0xff] %vm57_vm2, %v47_v2  ;;  %v1413_v6 = vld [vmem:[#allocation2] ss:$8 sps:$4 sm:$0xff]   ;;  %v1414_v7 = vld [vmem:[#allocation2 + $0x14] ss:$8 sps:$4 sm:$0xff]   ;;  %215 = vmatprep.subr.bf16.mxu1 %v1411_v5 }
  0x15   :  { %1394 = vmatpush3.bf16.msra.mxu0 %v63_v3  ;;  %216 = vmatpush1.bf16.msra.mxu1 %v1413_v6  ;;  %v1416_v8 = vld [vmem:[#allocation2 + $0x10] ss:$8 sps:$4 sm:$0xff]   ;;  %v1417_v9 = vld [vmem:[#allocation2 + $0x24] ss:$8 sps:$4 sm:$0xff]   ;;  %v1419_v10 = vld [vmem:[#allocation2 + $0x20] ss:$8 sps:$4 sm:$0xff]  }
  0x16   :  { %217 = vmatprep.subr.bf16.mxu1 %v1414_v7  ;;  %v1420_v11 = vld [vmem:[#allocation2 + $0x34] ss:$8 sps:$4 sm:$0xff]   ;;  %v1422_v12 = vld [vmem:[#allocation2 + $0x30] ss:$8 sps:$4 sm:$0xff]   ;;  %v1423_v13 = vld [vmem:[#allocation2 + $0x44] ss:$8 sps:$4 sm:$0xff]  }
  0x17   :  { %v1425_v14 = vld [vmem:[#allocation2 + $0x40] ss:$8 sps:$4 sm:$0xff]   ;;  %v1426_v15 = vld [vmem:[#allocation2 + $0x54] ss:$8 sps:$4 sm:$0xff]   ;;  %v1428_v16 = vld [vmem:[#allocation2 + $0x50] ss:$8 sps:$4 sm:$0xff]  }
  0x18   :  { %1396 = vmatmul.mubr.msk.bf16.vlgmr.msra.gmra.mrb[0].mxu0 %vm57_vm2, %v48_v4  ;;  %v1429_v17 = vld [vmem:[#allocation2 + $0x64] ss:$8 sps:$4 sm:$0xff]   ;;  %v1431_v18 = vld [vmem:[#allocation2 + $0x60] ss:$8 sps:$4 sm:$0xff]   ;;  %v1432_v19 = vld [vmem:[#allocation2 + $0x74] ss:$8 sps:$4 sm:$0xff]  }
  0x19   :  { %218 = vmatpush1.bf16.msra.mxu1 %v1416_v8  ;;  %v1434_v20 = vld [vmem:[#allocation2 + $0x70] ss:$8 sps:$4 sm:$0xff]   ;;  %v1656_v21 = vmov 0   ;;  %v1437_v22 = vld [vmem:[%s2164_s5 + $0x4] ss:$16 sps:$4 sm:$0xff]  }
  0x1a   :  { %219 = vmatprep.subr.bf16.mxu1 %v1417_v9  ;;  %247 = vmatprep.mubr.bf16.mxu1 %v1656_v21  ;;  %v1245_v23 = vld [vmem:[%s2161_s2] ss:$0 sm:$0xff]  ;;  %v1440_v32 = vld [vmem:[%s2164_s5 + $0x24] ss:$16 sps:$4 sm:$0xff]   ;;  %v1485_v62 = vld [vmem:[%s2164_s5 + $0xc] ss:$16 sps:$4 sm:$0xff]   ;;  %v125_v21 = vlaneseq }
  0x1b   :  { %v1435_v30 = vld [vmem:[%s2164_s5] ss:$16 sps:$4 sm:$0xff]   ;;  %v1443_v34 = vld [vmem:[%s2164_s5 + $0x44] ss:$16 sps:$4 sm:$0xff]  }
  0x1c   :  { %v1438_v33 = vld [vmem:[%s2164_s5 + $0x20] ss:$16 sps:$4 sm:$0xff]   ;;  %v1446_v36 = vld [vmem:[%s2164_s5 + $0x64] ss:$16 sps:$4 sm:$0xff]  }
  0x1d   :  { %220 = vmatpush1.bf16.msra.mxu1 %v1419_v10  ;;  %v1441_v35 = vld [vmem:[%s2164_s5 + $0x40] ss:$16 sps:$4 sm:$0xff]   ;;  %v1449_v38 = vld [vmem:[%s2164_s5 + $0x84] ss:$16 sps:$4 sm:$0xff]  }
  0x1e   :  { %221 = vmatprep.subr.bf16.mxu1 %v1420_v11  ;;  %v1444_v37 = vld [vmem:[%s2164_s5 + $0x60] ss:$16 sps:$4 sm:$0xff]   ;;  %v1452_v40 = vld [vmem:[%s2164_s5 + $0xa4] ss:$16 sps:$4 sm:$0xff]  }
  0x1f   :  { %v1447_v39 = vld [vmem:[%s2164_s5 + $0x80] ss:$16 sps:$4 sm:$0xff]   ;;  %v1455_v42 = vld [vmem:[%s2164_s5 + $0xc4] ss:$16 sps:$4 sm:$0xff]  }
  0x20   :  { %v1450_v41 = vld [vmem:[%s2164_s5 + $0xa0] ss:$16 sps:$4 sm:$0xff]   ;;  %v1458_v44 = vld [vmem:[%s2164_s5 + $0xe4] ss:$16 sps:$4 sm:$0xff]  }
  0x21   :  { %222 = vmatpush1.bf16.msra.mxu1 %v1422_v12  ;;  %v1453_v43 = vld [vmem:[%s2164_s5 + $0xc0] ss:$16 sps:$4 sm:$0xff]   ;;  %v1461_v46 = vld [vmem:[%s2164_s5 + $0x104] ss:$16 sps:$4 sm:$0xff]  }
  0x22   :  { %223 = vmatprep.subr.bf16.mxu1 %v1423_v13  ;;  %v1456_v45 = vld [vmem:[%s2164_s5 + $0xe0] ss:$16 sps:$4 sm:$0xff]   ;;  %v1464_v48 = vld [vmem:[%s2164_s5 + $0x124] ss:$16 sps:$4 sm:$0xff]  }
  0x23   :  { %v1459_v47 = vld [vmem:[%s2164_s5 + $0x100] ss:$16 sps:$4 sm:$0xff]   ;;  %v1467_v50 = vld [vmem:[%s2164_s5 + $0x144] ss:$16 sps:$4 sm:$0xff]  }
  0x24   :  { %v1462_v49 = vld [vmem:[%s2164_s5 + $0x120] ss:$16 sps:$4 sm:$0xff]   ;;  %v1470_v52 = vld [vmem:[%s2164_s5 + $0x164] ss:$16 sps:$4 sm:$0xff]  }
  0x25   :  { %224 = vmatpush1.bf16.msra.mxu1 %v1425_v14  ;;  %v1465_v51 = vld [vmem:[%s2164_s5 + $0x140] ss:$16 sps:$4 sm:$0xff]   ;;  %v1473_v54 = vld [vmem:[%s2164_s5 + $0x184] ss:$16 sps:$4 sm:$0xff]  }
  0x26   :  { %225 = vmatprep.subr.bf16.mxu1 %v1426_v15  ;;  %v1468_v53 = vld [vmem:[%s2164_s5 + $0x160] ss:$16 sps:$4 sm:$0xff]   ;;  %v1476_v56 = vld [vmem:[%s2164_s5 + $0x1a4] ss:$16 sps:$4 sm:$0xff]  }
  0x27   :  { %v1471_v55 = vld [vmem:[%s2164_s5 + $0x180] ss:$16 sps:$4 sm:$0xff]   ;;  %v1479_v58 = vld [vmem:[%s2164_s5 + $0x1c4] ss:$16 sps:$4 sm:$0xff]  }
  0x28   :  { %v1474_v57 = vld [vmem:[%s2164_s5 + $0x1a0] ss:$16 sps:$4 sm:$0xff]   ;;  %v1482_v60 = vld [vmem:[%s2164_s5 + $0x1e4] ss:$16 sps:$4 sm:$0xff]  }
  0x29   :  { %226 = vmatpush1.bf16.msra.mxu1 %v1428_v16  ;;  %v1477_v59 = vld [vmem:[%s2164_s5 + $0x1c0] ss:$16 sps:$4 sm:$0xff]   ;;  %v1533_v0 = vld [vmem:[%s2166_s7 + $0x4] ss:$8 sps:$4 sm:$0xff]   ;;  %v1536_v1 = vld [vmem:[%s2166_s7 + $0x14] ss:$8 sps:$4 sm:$0xff]  }
  0x2a   :  { %227 = vmatprep.subr.bf16.mxu1 %v1429_v17  ;;  %v1480_v61 = vld [vmem:[%s2164_s5 + $0x1e0] ss:$16 sps:$4 sm:$0xff]   ;;  %1152 = vmatprep.subr.bf16.mxu0 %v1533_v0  ;;  %v1539_v3 = vld [vmem:[%s2166_s7 + $0x24] ss:$8 sps:$4 sm:$0xff]   ;;  %v1542_v5 = vld [vmem:[%s2166_s7 + $0x34] ss:$8 sps:$4 sm:$0xff]  }
  0x2b   :  { %v1531_v63 = vld [vmem:[%s2166_s7] ss:$8 sps:$4 sm:$0xff]   ;;  %v1534_v2 = vld [vmem:[%s2166_s7 + $0x10] ss:$8 sps:$4 sm:$0xff]   ;;  %v1545_v7 = vld [vmem:[%s2166_s7 + $0x44] ss:$8 sps:$4 sm:$0xff]  }
  0x2c   :  { %1153 = vmatpush1.bf16.msra.mxu0 %v1531_v63  ;;  %v1537_v4 = vld [vmem:[%s2166_s7 + $0x20] ss:$8 sps:$4 sm:$0xff]   ;;  %v1540_v6 = vld [vmem:[%s2166_s7 + $0x30] ss:$8 sps:$4 sm:$0xff]   ;;  %v1548_v9 = vld [vmem:[%s2166_s7 + $0x54] ss:$8 sps:$4 sm:$0xff]  }
  0x2d   :  { %228 = vmatpush1.bf16.msra.mxu1 %v1431_v18  ;;  %1154 = vmatprep.subr.bf16.mxu0 %v1536_v1  ;;  %v1543_v8 = vld [vmem:[%s2166_s7 + $0x40] ss:$8 sps:$4 sm:$0xff]   ;;  %v1546_v10 = vld [vmem:[%s2166_s7 + $0x50] ss:$8 sps:$4 sm:$0xff]   ;;  %v1551_v11 = vld [vmem:[%s2166_s7 + $0x64] ss:$8 sps:$4 sm:$0xff]  }
  0x2e   :  { %229 = vmatprep.subr.bf16.mxu1 %v1432_v19  ;;  %v1549_v12 = vld [vmem:[%s2166_s7 + $0x60] ss:$8 sps:$4 sm:$0xff]   ;;  %v1554_v13 = vld [vmem:[%s2166_s7 + $0x74] ss:$8 sps:$4 sm:$0xff]   ;;  %v1552_v14 = vld [vmem:[%s2166_s7 + $0x70] ss:$8 sps:$4 sm:$0xff]  }
  0x2f   :  { %v1557_v15 = vld [vmem:[%s2166_s7 + $0x84] ss:$8 sps:$4 sm:$0xff]   ;;  %v1555_v16 = vld [vmem:[%s2166_s7 + $0x80] ss:$8 sps:$4 sm:$0xff]   ;;  %v1560_v17 = vld [vmem:[%s2166_s7 + $0x94] ss:$8 sps:$4 sm:$0xff]  }
  0x30   :  { %1155 = vmatpush1.bf16.msra.mxu0 %v1534_v2  ;;  %v1558_v18 = vld [vmem:[%s2166_s7 + $0x90] ss:$8 sps:$4 sm:$0xff]   ;;  %v1563_v19 = vld [vmem:[%s2166_s7 + $0xa4] ss:$8 sps:$4 sm:$0xff]  }
  0x31   :  { %230 = vmatpush1.bf16.msra.mxu1 %v1434_v20  ;;  %1156 = vmatprep.subr.bf16.mxu0 %v1539_v3  ;;  %v1561_v20 = vld [vmem:[%s2166_s7 + $0xa0] ss:$8 sps:$4 sm:$0xff]   ;;  %v1515_v63 = vld [vmem:[%s2164_s5 + $0x14c] ss:$16 sps:$4 sm:$0xff]  }
  0x32   :  { %666 = vmatprep.subr.bf16.mxu1 %v1437_v22  ;;  %v1566_v22 = vld [vmem:[%s2166_s7 + $0xb4] ss:$8 sps:$4 sm:$0xff]   ;;  %v1513_v0 = vld [vmem:[%s2164_s5 + $0x148] ss:$16 sps:$4 sm:$0xff]  }
  0x33   :  { %v1518_v1 = vld [vmem:[%s2164_s5 + $0x16c] ss:$16 sps:$4 sm:$0xff]   ;;  %v1516_v2 = vld [vmem:[%s2164_s5 + $0x168] ss:$16 sps:$4 sm:$0xff]  }
  0x34   :  { %1157 = vmatpush1.bf16.msra.mxu0 %v1537_v4  ;;  %v1521_v3 = vld [vmem:[%s2164_s5 + $0x18c] ss:$16 sps:$4 sm:$0xff]   ;;  %v1519_v4 = vld [vmem:[%s2164_s5 + $0x188] ss:$16 sps:$4 sm:$0xff]  }
  0x35   :  { %1158 = vmatprep.subr.bf16.mxu0 %v1542_v5  ;;  %v1524_v5 = vld [vmem:[%s2164_s5 + $0x1ac] ss:$16 sps:$4 sm:$0xff]  }
  0x38   :  { %1159 = vmatpush1.bf16.msra.mxu0 %v1540_v6  ;;  %v1522_v6 = vld [vmem:[%s2164_s5 + $0x1a8] ss:$16 sps:$4 sm:$0xff]  }
  0x39   :  { %1160 = vmatprep.subr.bf16.mxu0 %v1545_v7  ;;  %v1527_v7 = vld [vmem:[%s2164_s5 + $0x1cc] ss:$16 sps:$4 sm:$0xff]  }
  0x3c   :  { %1161 = vmatpush1.bf16.msra.mxu0 %v1543_v8  ;;  %v1525_v8 = vld [vmem:[%s2164_s5 + $0x1c8] ss:$16 sps:$4 sm:$0xff]  }
  0x3d   :  { %1162 = vmatprep.subr.bf16.mxu0 %v1548_v9  ;;  %v1530_v9 = vld [vmem:[%s2164_s5 + $0x1ec] ss:$16 sps:$4 sm:$0xff]  }
  0x40   :  { %1163 = vmatpush1.bf16.msra.mxu0 %v1546_v10  ;;  %v1528_v10 = vld [vmem:[%s2164_s5 + $0x1e8] ss:$16 sps:$4 sm:$0xff]  }
  0x41   :  { %1164 = vmatprep.subr.bf16.mxu0 %v1551_v11  ;;  %v1575_v11 = vld [vmem:[%s2166_s7 + $0xe4] ss:$8 sps:$4 sm:$0xff]  }
  0x44   :  { %1165 = vmatpush1.bf16.msra.mxu0 %v1549_v12  ;;  %v1573_v12 = vld [vmem:[%s2166_s7 + $0xe0] ss:$8 sps:$4 sm:$0xff]  }
  0x45   :  { %1166 = vmatprep.subr.bf16.mxu0 %v1554_v13  ;;  %v1578_v13 = vld [vmem:[%s2166_s7 + $0xf4] ss:$8 sps:$4 sm:$0xff]  }
  0x48   :  { %1167 = vmatpush1.bf16.msra.mxu0 %v1552_v14  ;;  %v1576_v14 = vld [vmem:[%s2166_s7 + $0xf0] ss:$8 sps:$4 sm:$0xff]  }
  0x49   :  { %1168 = vmatprep.subr.bf16.mxu0 %v1557_v15  ;;  %v1581_v15 = vld [vmem:[%s2166_s7 + $0x104] ss:$8 sps:$4 sm:$0xff]  }
  0x4c   :  { %1169 = vmatpush1.bf16.msra.mxu0 %v1555_v16  ;;  %v2045_v16 = vld [vmem:[%s2165_s6] sm:$0xf] }
  0x4d   :  { %1170 = vmatprep.subr.bf16.mxu0 %v1560_v17 }
  0x50   :  { %1171 = vmatpush1.bf16.msra.mxu0 %v1558_v18 }
  0x51   :  { %1172 = vmatprep.subr.bf16.mxu0 %v1563_v19 }
  0x54   :  { %1173 = vmatpush1.bf16.msra.mxu0 %v1561_v20 }
  0x55   :  { %1174 = vmatprep.subr.bf16.mxu0 %v1566_v22 }
  0xeb   :  { %v99_v24 = vpop.f32.mrb[0].mxu0 }
  0xec   :  { %v100_v25 = vadd.f32 %v1245_v23, %v99_v24  ;;  %v1397_v26 = vpop.f32.mrb[1].mxu0  ;;  %v1564_v23 = vld [vmem:[%s2166_s7 + $0xb0] ss:$8 sps:$4 sm:$0xff]   ;;  %v1905_v24 = vshrl.u32 %v125_v21, 7 }
  0xed   :  { %v102_v27 = vpop.f32.mrb[2].mxu0  ;;  %1175 = vmatpush1.bf16.msra.mxu0 %v1564_v23  ;;  %v1567_v26 = vld [vmem:[%s2166_s7 + $0xc0] ss:$8 sps:$4 sm:$0xff]  }
  0xee   :  { %v105_v28 = vmax.f32 %v100_v25, 0.0  ;;  %v1398_v29 = vpop.f32.mrb[3].mxu0  ;;  %v1569_v25 = vld [vmem:[%s2166_s7 + $0xc4] ss:$8 sps:$4 sm:$0xff]   ;;  %v1914_v27 = vsub.s32 0, %v1905_v24 }
  0xef   :  { %1176 = vmatprep.subr.bf16.mxu0 %v1569_v25  ;;  %v123_v29 = vld [vmem:[%s2163_s4] sm:$0x3] }
  0xf0   :  { %v106_v31 = vpack.c.bf16 %v105_v28, %v105_v28  ;;  %v1572_v28 = vld [vmem:[%s2166_s7 + $0xd4] ss:$8 sps:$4 sm:$0xff]   ;;  %v329_v17 = vrot.slane %v2045_v16, %v1914_v27 }
  0xf1   :  { %1177 = vmatpush1.bf16.msra.mxu0 %v1567_v26 }
  0xf2   :  { %248 = vmatmul.mubr.bf16.vlgmr.msra.gmra.mrb[0].mxu1 %v106_v31  ;;  %v1570_v31 = vld [vmem:[%s2166_s7 + $0xd0] ss:$8 sps:$4 sm:$0xff]   ;;  %1178 = vmatprep.subr.bf16.mxu0 %v1572_v28 }
  0xf3   :  { %667 = vmatpush1.bf16.msra.mxu1 %v1435_v30  ;;  %v1923_v30 = vsub.s32 1, %v1905_v24 }
  0xf4   :  { %668 = vmatprep.subr.bf16.mxu1 %v1440_v32  ;;  %v128_v32 = vrot.slane %v123_v29, %v1914_v27 }
  0xf5   :  { %1179 = vmatpush1.bf16.msra.mxu0 %v1570_v31  ;;  %v333_v18 = vrot.slane %v2045_v16, %v1923_v30  ;;  %v1579_v31 = vld [vmem:[%s2166_s7 + $0x100] ss:$8 sps:$4 sm:$0xff]  }
  0xf6   :  { %1180 = vmatprep.subr.bf16.mxu0 %v1575_v11 }
  0xf7   :  { %669 = vmatpush1.bf16.msra.mxu1 %v1438_v33  ;;  %v132_v33 = vrot.slane %v123_v29, %v1923_v30 }
  0xf8   :  { %670 = vmatprep.subr.bf16.mxu1 %v1443_v34 }
  0xf9   :  { %1181 = vmatpush1.bf16.msra.mxu0 %v1573_v12  ;;  %v820_v12 = vld [vmem:[%s2167_s8] sm:$0x3] }
  0xfa   :  { %1182 = vmatprep.subr.bf16.mxu0 %v1578_v13  ;;  %v825_v13 = vrot.slane %v820_v12, %v1914_v27 }
  0xfb   :  { %671 = vmatpush1.bf16.msra.mxu1 %v1441_v35 }
  0xfc   :  { %672 = vmatprep.subr.bf16.mxu1 %v1446_v36 }
  0xfd   :  { %1183 = vmatpush1.bf16.msra.mxu0 %v1576_v14  ;;  %v829_v14 = vrot.slane %v820_v12, %v1923_v30 }
  0xfe   :  { %1193 = vmatprep.subr.bf16.mxu0 %v1581_v15 }
  0xff   :  { %673 = vmatpush1.bf16.msra.mxu1 %v1444_v37 }
 0x100   :  { %674 = vmatprep.subr.bf16.mxu1 %v1449_v38 }
 0x103   :  { %675 = vmatpush1.bf16.msra.mxu1 %v1447_v39 }
 0x104   :  { %676 = vmatprep.subr.bf16.mxu1 %v1452_v40 }
 0x107   :  { %677 = vmatpush1.bf16.msra.mxu1 %v1450_v41 }
 0x108   :  { %678 = vmatprep.subr.bf16.mxu1 %v1455_v42 }
 0x10b   :  { %679 = vmatpush1.bf16.msra.mxu1 %v1453_v43  ;;  %v1483_v43 = vld [vmem:[%s2164_s5 + $0x8] ss:$16 sps:$4 sm:$0xff]  }
 0x10c   :  { %680 = vmatprep.subr.bf16.mxu1 %v1458_v44 }
 0x10f   :  { %681 = vmatpush1.bf16.msra.mxu1 %v1456_v45  ;;  %v1488_v45 = vld [vmem:[%s2164_s5 + $0x2c] ss:$16 sps:$4 sm:$0xff]  }
 0x110   :  { %682 = vmatprep.subr.bf16.mxu1 %v1461_v46  ;;  %v1486_v46 = vld [vmem:[%s2164_s5 + $0x28] ss:$16 sps:$4 sm:$0xff]  }
 0x113   :  { %683 = vmatpush1.bf16.msra.mxu1 %v1459_v47  ;;  %v1491_v47 = vld [vmem:[%s2164_s5 + $0x4c] ss:$16 sps:$4 sm:$0xff]  }
 0x114   :  { %684 = vmatprep.subr.bf16.mxu1 %v1464_v48  ;;  %v1489_v48 = vld [vmem:[%s2164_s5 + $0x48] ss:$16 sps:$4 sm:$0xff]  }
 0x117   :  { %685 = vmatpush1.bf16.msra.mxu1 %v1462_v49  ;;  %v1494_v49 = vld [vmem:[%s2164_s5 + $0x6c] ss:$16 sps:$4 sm:$0xff]  }
 0x118   :  { %686 = vmatprep.subr.bf16.mxu1 %v1467_v50  ;;  %v1492_v50 = vld [vmem:[%s2164_s5 + $0x68] ss:$16 sps:$4 sm:$0xff]  }
 0x11b   :  { %687 = vmatpush1.bf16.msra.mxu1 %v1465_v51  ;;  %v1497_v51 = vld [vmem:[%s2164_s5 + $0x8c] ss:$16 sps:$4 sm:$0xff]  }
 0x11c   :  { %688 = vmatprep.subr.bf16.mxu1 %v1470_v52  ;;  %v1495_v52 = vld [vmem:[%s2164_s5 + $0x88] ss:$16 sps:$4 sm:$0xff]  }
 0x11f   :  { %689 = vmatpush1.bf16.msra.mxu1 %v1468_v53  ;;  %v1500_v53 = vld [vmem:[%s2164_s5 + $0xac] ss:$16 sps:$4 sm:$0xff]  }
 0x120   :  { %690 = vmatprep.subr.bf16.mxu1 %v1473_v54  ;;  %v1498_v54 = vld [vmem:[%s2164_s5 + $0xa8] ss:$16 sps:$4 sm:$0xff]  }
 0x123   :  { %691 = vmatpush1.bf16.msra.mxu1 %v1471_v55  ;;  %v1503_v55 = vld [vmem:[%s2164_s5 + $0xcc] ss:$16 sps:$4 sm:$0xff]  }
 0x124   :  { %692 = vmatprep.subr.bf16.mxu1 %v1476_v56  ;;  %v1501_v56 = vld [vmem:[%s2164_s5 + $0xc8] ss:$16 sps:$4 sm:$0xff]  }
 0x127   :  { %693 = vmatpush1.bf16.msra.mxu1 %v1474_v57  ;;  %v1506_v57 = vld [vmem:[%s2164_s5 + $0xec] ss:$16 sps:$4 sm:$0xff]  }
 0x128   :  { %694 = vmatprep.subr.bf16.mxu1 %v1479_v58  ;;  %v1504_v58 = vld [vmem:[%s2164_s5 + $0xe8] ss:$16 sps:$4 sm:$0xff]  }
 0x12b   :  { %695 = vmatpush1.bf16.msra.mxu1 %v1477_v59  ;;  %v1509_v59 = vld [vmem:[%s2164_s5 + $0x10c] ss:$16 sps:$4 sm:$0xff]  }
 0x12c   :  { %696 = vmatprep.subr.bf16.mxu1 %v1482_v60  ;;  %v1507_v60 = vld [vmem:[%s2164_s5 + $0x108] ss:$16 sps:$4 sm:$0xff]  }
 0x12f   :  { %697 = vmatpush1.bf16.msra.mxu1 %v1480_v61  ;;  %v1512_v61 = vld [vmem:[%s2164_s5 + $0x12c] ss:$16 sps:$4 sm:$0xff]  }
 0x130   :  { %707 = vmatprep.subr.bf16.mxu1 %v1485_v62  ;;  %v1510_v62 = vld [vmem:[%s2164_s5 + $0x128] ss:$16 sps:$4 sm:$0xff]  }
 0x1c5   :  { %v249_v34 = vpop.f32.mrb[0].mxu1 }
 0x1c6   :  { %v250_v35 = vadd.f32 %v249_v34, %v128_v32  ;;  %v251_v36 = vpop.f32.mrb[1].mxu1  ;;  %v1582_v34 = vld [vmem:[%s2166_s7 + $0x110] ss:$8 sps:$4 sm:$0xff]  }
 0x1c7   :  { %v252_v37 = vadd.f32 %v251_v36, %v132_v33  ;;  %v253_v38 = vpop.f32.mrb[2].mxu1  ;;  %v1584_v33 = vld [vmem:[%s2166_s7 + $0x114] ss:$8 sps:$4 sm:$0xff]   ;;  %v1585_v36 = vld [vmem:[%s2166_s7 + $0x120] ss:$8 sps:$4 sm:$0xff]  }
 0x1c8   :  { %v256_v39 = vmax.f32 %v250_v35, 0.0  ;;  %v254_v40 = vpop.f32.mrb[3].mxu1  ;;  %v1587_v35 = vld [vmem:[%s2166_s7 + $0x124] ss:$8 sps:$4 sm:$0xff]   ;;  %v1588_v38 = vld [vmem:[%s2166_s7 + $0x130] ss:$8 sps:$4 sm:$0xff]  }
 0x1c9   :  { %v257_v41 = vmax.f32 %v252_v37, 0.0  ;;  %v1590_v37 = vld [vmem:[%s2166_s7 + $0x134] ss:$8 sps:$4 sm:$0xff]   ;;  %v1591_v40 = vld [vmem:[%s2166_s7 + $0x140] ss:$8 sps:$4 sm:$0xff]  }
 0x1ca   :  { %v1933_v44 = vpack.c.bf16 %v256_v39, %v256_v39  ;;  %v1593_v39 = vld [vmem:[%s2166_s7 + $0x144] ss:$8 sps:$4 sm:$0xff]  }
 0x1cb   :  { %v259_v42 = vpack.c.bf16 %v257_v41, %v257_v41  ;;  %v1596_v41 = vld [vmem:[%s2166_s7 + $0x154] ss:$8 sps:$4 sm:$0xff]  }
 0x1cd   :  { %698 = vmatprep.mubr.bf16.mxu1 %v259_v42 }
 0x1ce   :  { %699 = vmatmul.mubr.bf16.vlgmr.msra.gmra.mrb[4].mxu1 %v1933_v44 }
 0x1cf   :  { %708 = vmatpush1.bf16.msra.mxu1 %v1483_v43  ;;  %739 = vmatprep.mubr.bf16.mxu1 %v259_v42  ;;  %v1594_v42 = vld [vmem:[%s2166_s7 + $0x150] ss:$8 sps:$4 sm:$0xff]   ;;  %v1599_v43 = vld [vmem:[%s2166_s7 + $0x164] ss:$8 sps:$4 sm:$0xff]  }
 0x1d0   :  { %709 = vmatprep.subr.bf16.mxu1 %v1488_v45  ;;  %v1602_v45 = vld [vmem:[%s2166_s7 + $0x174] ss:$8 sps:$4 sm:$0xff]  }
 0x1d3   :  { %710 = vmatpush1.bf16.msra.mxu1 %v1486_v46  ;;  %v1600_v46 = vld [vmem:[%s2166_s7 + $0x170] ss:$8 sps:$4 sm:$0xff]  }
 0x1d4   :  { %711 = vmatprep.subr.bf16.mxu1 %v1491_v47  ;;  %v1605_v47 = vld [vmem:[%s2166_s7 + $0x184] ss:$8 sps:$4 sm:$0xff]  }
 0x1d7   :  { %712 = vmatpush1.bf16.msra.mxu1 %v1489_v48  ;;  %v1603_v48 = vld [vmem:[%s2166_s7 + $0x180] ss:$8 sps:$4 sm:$0xff]  }
 0x1d8   :  { %713 = vmatprep.subr.bf16.mxu1 %v1494_v49  ;;  %v1608_v49 = vld [vmem:[%s2166_s7 + $0x194] ss:$8 sps:$4 sm:$0xff]  }
 0x1db   :  { %714 = vmatpush1.bf16.msra.mxu1 %v1492_v50  ;;  %v1606_v50 = vld [vmem:[%s2166_s7 + $0x190] ss:$8 sps:$4 sm:$0xff]  }
 0x1dc   :  { %715 = vmatprep.subr.bf16.mxu1 %v1497_v51  ;;  %v1611_v51 = vld [vmem:[%s2166_s7 + $0x1a4] ss:$8 sps:$4 sm:$0xff]  }
 0x1df   :  { %716 = vmatpush1.bf16.msra.mxu1 %v1495_v52  ;;  %v1609_v52 = vld [vmem:[%s2166_s7 + $0x1a0] ss:$8 sps:$4 sm:$0xff]  }
 0x1e0   :  { %717 = vmatprep.subr.bf16.mxu1 %v1500_v53  ;;  %v1614_v53 = vld [vmem:[%s2166_s7 + $0x1b4] ss:$8 sps:$4 sm:$0xff]  }
 0x1e3   :  { %718 = vmatpush1.bf16.msra.mxu1 %v1498_v54  ;;  %v1612_v54 = vld [vmem:[%s2166_s7 + $0x1b0] ss:$8 sps:$4 sm:$0xff]  }
 0x1e4   :  { %719 = vmatprep.subr.bf16.mxu1 %v1503_v55  ;;  %v1617_v55 = vld [vmem:[%s2166_s7 + $0x1c4] ss:$8 sps:$4 sm:$0xff]  }
 0x1e7   :  { %720 = vmatpush1.bf16.msra.mxu1 %v1501_v56  ;;  %v1615_v56 = vld [vmem:[%s2166_s7 + $0x1c0] ss:$8 sps:$4 sm:$0xff]  }
 0x1e8   :  { %721 = vmatprep.subr.bf16.mxu1 %v1506_v57  ;;  %v1620_v57 = vld [vmem:[%s2166_s7 + $0x1d4] ss:$8 sps:$4 sm:$0xff]  }
 0x1eb   :  { %722 = vmatpush1.bf16.msra.mxu1 %v1504_v58  ;;  %v336_v58 = vsub.s32 2, %v1905_v24 }
 0x1ec   :  { %723 = vmatprep.subr.bf16.mxu1 %v1509_v59  ;;  %v1618_v59 = vld [vmem:[%s2166_s7 + $0x1d0] ss:$8 sps:$4 sm:$0xff]  }
 0x1ef   :  { %724 = vmatpush1.bf16.msra.mxu1 %v1507_v60  ;;  %v340_v60 = vsub.s32 3, %v1905_v24 }
 0x1f0   :  { %725 = vmatprep.subr.bf16.mxu1 %v1512_v61  ;;  %v1623_v61 = vld [vmem:[%s2166_s7 + $0x1e4] ss:$8 sps:$4 sm:$0xff]  }
 0x1f3   :  { %726 = vmatpush1.bf16.msra.mxu1 %v1510_v62  ;;  %v337_v62 = vrot.slane %v2045_v16, %v336_v58 }
 0x1f4   :  { %727 = vmatprep.subr.bf16.mxu1 %v1515_v63  ;;  %v341_v63 = vrot.slane %v2045_v16, %v340_v60 }
 0x1f7   :  { %728 = vmatpush1.bf16.msra.mxu1 %v1513_v0  ;;  %v1621_v0 = vld [vmem:[%s2166_s7 + $0x1e0] ss:$8 sps:$4 sm:$0xff]  }
 0x1f8   :  { %729 = vmatprep.subr.bf16.mxu1 %v1518_v1  ;;  %v1626_v1 = vld [vmem:[%s2166_s7 + $0x1f4] ss:$8 sps:$4 sm:$0xff]  }
 0x1fb   :  { %730 = vmatpush1.bf16.msra.mxu1 %v1516_v2 }
 0x1fc   :  { %731 = vmatprep.subr.bf16.mxu1 %v1521_v3 }
 0x1ff   :  { %732 = vmatpush1.bf16.msra.mxu1 %v1519_v4 }
 0x200   :  { %733 = vmatprep.subr.bf16.mxu1 %v1524_v5 }
 0x203   :  { %734 = vmatpush1.bf16.msra.mxu1 %v1522_v6  ;;  %v1624_v6 = vld [vmem:[%s2166_s7 + $0x1f0] ss:$8 sps:$4 sm:$0xff]  }
 0x204   :  { %735 = vmatprep.subr.bf16.mxu1 %v1527_v7 }
 0x207   :  { %736 = vmatpush1.bf16.msra.mxu1 %v1525_v8 }
 0x208   :  { %737 = vmatprep.subr.bf16.mxu1 %v1530_v9 }
 0x20b   :  { %738 = vmatpush1.bf16.msra.mxu1 %v1528_v10 }
 0x20e   :  { %740 = vmatmul.mubr.bf16.vlgmr.msra.gmra.mrb[8].mxu1 %v1933_v44  ;;  %v1597_v44 = vld [vmem:[%s2166_s7 + $0x160] ss:$8 sps:$4 sm:$0xff]  }
 0x2a1   :  { %v700_v19 = vpop.f32.mrb[4].mxu1 }
 0x2a2   :  { %v701_v20 = vadd.f32 %v700_v19, %v329_v17  ;;  %v702_v21 = vpop.f32.mrb[5].mxu1 }
 0x2a3   :  { %v703_v22 = vadd.f32 %v702_v21, %v333_v18  ;;  %v704_v23 = vpop.f32.mrb[6].mxu1 }
 0x2a4   :  { %v748_v25 = vmax.f32 %v701_v20, 0.0  ;;  %v705_v26 = vpop.f32.mrb[7].mxu1 }
 0x2a5   :  { %v749_v28 = vmax.f32 %v703_v22, 0.0 }
 0x2a6   :  { %v752_v32 = vpack.c.bf16 %v748_v25, %v748_v25 }
 0x2a7   :  { %v753_v29 = vpack.c.bf16 %v749_v28, %v749_v28 }
 0x2a9   :  { %1184 = vmatprep.mubr.bf16.mxu0 %v753_v29 }
 0x2aa   :  { %1185 = vmatmul.mubr.bf16.vlgmr.msra.gmra.mrb[4].mxu0 %v752_v32 }
 0x2ab   :  { %1194 = vmatpush1.bf16.msra.mxu0 %v1579_v31 }
 0x2ac   :  { %1195 = vmatprep.subr.bf16.mxu0 %v1584_v33 }
 0x2af   :  { %1196 = vmatpush1.bf16.msra.mxu0 %v1582_v34 }
 0x2b0   :  { %1197 = vmatprep.subr.bf16.mxu0 %v1587_v35 }
 0x2b3   :  { %1198 = vmatpush1.bf16.msra.mxu0 %v1585_v36 }
 0x2b4   :  { %1199 = vmatprep.subr.bf16.mxu0 %v1590_v37 }
 0x2b7   :  { %1200 = vmatpush1.bf16.msra.mxu0 %v1588_v38 }
 0x2b8   :  { %1201 = vmatprep.subr.bf16.mxu0 %v1593_v39 }
 0x2bb   :  { %1202 = vmatpush1.bf16.msra.mxu0 %v1591_v40 }
 0x2bc   :  { %1203 = vmatprep.subr.bf16.mxu0 %v1596_v41 }
 0x2bf   :  { %1204 = vmatpush1.bf16.msra.mxu0 %v1594_v42 }
 0x2c0   :  { %1205 = vmatprep.subr.bf16.mxu0 %v1599_v43 }
 0x2c3   :  { %1206 = vmatpush1.bf16.msra.mxu0 %v1597_v44 }
 0x2c4   :  { %1207 = vmatprep.subr.bf16.mxu0 %v1602_v45 }
 0x2c7   :  { %1208 = vmatpush1.bf16.msra.mxu0 %v1600_v46 }
 0x2c8   :  { %1209 = vmatprep.subr.bf16.mxu0 %v1605_v47 }
 0x2cb   :  { %1210 = vmatpush1.bf16.msra.mxu0 %v1603_v48 }
 0x2cc   :  { %1211 = vmatprep.subr.bf16.mxu0 %v1608_v49 }
 0x2cf   :  { %1212 = vmatpush1.bf16.msra.mxu0 %v1606_v50 }
 0x2d0   :  { %1213 = vmatprep.subr.bf16.mxu0 %v1611_v51 }
 0x2d3   :  { %1214 = vmatpush1.bf16.msra.mxu0 %v1609_v52 }
 0x2d4   :  { %1215 = vmatprep.subr.bf16.mxu0 %v1614_v53 }
 0x2d7   :  { %1216 = vmatpush1.bf16.msra.mxu0 %v1612_v54 }
 0x2d8   :  { %1217 = vmatprep.subr.bf16.mxu0 %v1617_v55 }
 0x2db   :  { %1218 = vmatpush1.bf16.msra.mxu0 %v1615_v56 }
 0x2dc   :  { %1219 = vmatprep.subr.bf16.mxu0 %v1620_v57 }
 0x2df   :  { %1220 = vmatpush1.bf16.msra.mxu0 %v1618_v59 }
 0x2e0   :  { %1221 = vmatprep.subr.bf16.mxu0 %v1623_v61 }
 0x2e1   :  { %v741_v24 = vpop.f32.mrb[8].mxu1 }
 0x2e2   :  { %v742_v2 = vadd.f32 %v741_v24, %v337_v62  ;;  %v743_v3 = vpop.f32.mrb[9].mxu1 }
 0x2e3   :  { %v744_v4 = vadd.f32 %v743_v3, %v341_v63  ;;  %v745_v5 = vpop.f32.mrb[10].mxu1  ;;  %1222 = vmatpush1.bf16.msra.mxu0 %v1621_v0 }
 0x2e4   :  { %v750_v7 = vmax.f32 %v742_v2, 0.0  ;;  %v746_v8 = vpop.f32.mrb[11].mxu1  ;;  %1223 = vmatprep.subr.bf16.mxu0 %v1626_v1 }
 0x2e5   :  { %v751_v9 = vmax.f32 %v744_v4, 0.0 }
 0x2e6   :  { %v754_v11 = vpack.c.bf16 %v750_v7, %v750_v7 }
 0x2e7   :  { %v755_v10 = vpack.c.bf16 %v751_v9, %v751_v9  ;;  %1224 = vmatpush1.bf16.msra.mxu0 %v1624_v6 }
 0x2e9   :  { %1225 = vmatprep.mubr.bf16.mxu0 %v755_v10 }
 0x2ea   :  { %1226 = vmatmul.mubr.bf16.vlgmr.msra.gmra.mrb[4].mxu0 %v754_v11 }
 0x3bd   :  { %v1227_v15 = vpop.f32.mrb[4].mxu0 }
 0x3be   :  { %v1399_v16 = vadd.f32 %v1227_v15, %v825_v13  ;;  %v1229_v17 = vpop.f32.mrb[5].mxu0 }
 0x3bf   :  { %v1400_v18 = vadd.f32 %v1229_v17, %v829_v14  ;;  %v1231_v19 = vpop.f32.mrb[6].mxu0 }
 0x3c0   :  { %1237 = vst [vmem:[%s2168_s9] sm:$0xff] %v1399_v16  ;;  %v1232_v20 = vpop.f32.mrb[7].mxu0 }
 0x3c1   :  { %1238 = vst [vmem:[%s2168_s9 + $0x8] sm:$0xff] %v1400_v18 }
 0x3c2   :  { %1244 = vsyncpa [#allocation3], 1 }

</bundles_post_ra>
